<compile_context>
chip_gen: v7x
topology: tpu7x:2x2x1
jax: 0.10.0
libtpu: 0.0.40
codegen_flags: <defaults>
</compile_context>

<pallas_src>
import functools

import jax
import jax.numpy as jnp
import numpy as np
from jax.experimental import pallas as pl
from jax.experimental.pallas import tpu as pltpu

LN_EPS = 1e-6      # norm_layer = partial(nn.LayerNorm, eps=1e-6)
NEG_INF = -1e30


# ----------------------------------------------------------------------------
# In-kernel helpers
# ----------------------------------------------------------------------------
def _layernorm(x, g, b):
    mu = jnp.mean(x, axis=-1, keepdims=True)
    var = jnp.mean((x - mu) ** 2, axis=-1, keepdims=True)
    return (x - mu) * jax.lax.rsqrt(var + LN_EPS) * g + b


# ----------------------------------------------------------------------------
# Kernels
# ----------------------------------------------------------------------------
def embed_kernel(n_patches, xp_ref, w_ref, b_ref, cls_ref, pos_ref, o_ref):
    # xp : (B*Npad, P)  zero-padded so patch j sits at sequence row j+1
    # w  : (P, D)   b: (1, D)   cls: (1, D)   pos: (1, Npad, D)
    # o  : (B, Npad, D)  rows = [cls, patches@W+b, 0-pad] + pos
    nb, npad, d = o_ref.shape
    emb = jnp.dot(xp_ref[...], w_ref[...],
                  preferred_element_type=jnp.float32) + b_ref[...]   # (B*Npad, D)
    emb = emb.reshape(nb, npad, d)
    row = jax.lax.broadcasted_iota(jnp.int32, (1, npad, 1), 1)
    seq = jnp.where(row == 0, cls_ref[...].reshape(1, 1, d),
                    jnp.where(row <= n_patches, emb, 0.0))
    o_ref[...] = seq + pos_ref[...]


def blocks_kernel(num_heads,
                  x_ref, mask_ref,
                  ln1g_ref, ln1b_ref, wqkv_ref, bqkv_ref,
                  wproj_ref, bproj_ref, ln2g_ref, ln2b_ref,
                  w1_ref, b1_ref, w2_ref, b2_ref,
                  o_ref, acc_ref):
    layer = pl.program_id(0)
    n_layers = pl.num_programs(0)
    nb, npad, c = x_ref.shape
    hd = c // num_heads
    rows = nb * npad

    # Load the embedded sequence into the resident VMEM accumulator once.
    @pl.when(layer == 0)
    def _():
        acc_ref[...] = x_ref[...].reshape(rows, c)

    x = acc_ref[...]                                   # (B*Npad, C) f32 resident
    mask = mask_ref[...]                               # (1, Npad) additive bias

    # --- attention branch: x + proj(softmax(q k^T) v)  (scale folded in wqkv)
    h = _layernorm(x, ln1g_ref[0], ln1b_ref[0])
    qkv = jnp.dot(h.astype(jnp.bfloat16), wqkv_ref[0],
                  preferred_element_type=jnp.float32) + bqkv_ref[0]  # (rows, 3C)
    qkv = qkv.reshape(nb, npad, 3 * c)
    wproj = wproj_ref[0]                               # (C, C) bf16

    # Per-head 3-D einsums batched over B; the output projection is
    # accumulated per head so no transpose / concat is materialized.
    att_out = bproj_ref[0]                             # (1, C) f32, broadcasts
    for hix in range(num_heads):
        lo, hi = hix * hd, (hix + 1) * hd
        q = qkv[:, :, lo:hi].astype(jnp.bfloat16)              # (B, Npad, hd)
        k = qkv[:, :, c + lo:c + hi].astype(jnp.bfloat16)
        v = qkv[:, :, 2 * c + lo:2 * c + hi].astype(jnp.bfloat16)
        s = jnp.einsum('bnd,bmd->bnm', q, k,
                       preferred_element_type=jnp.float32)      # (B, Npad, Npad)
        s = s + mask                                            # mask pad keys
        s = s - jnp.max(s, axis=-1, keepdims=True)
        p = jnp.exp(s)
        p = p * pl.reciprocal(jnp.sum(p, axis=-1, keepdims=True), approx=True)
        a = jnp.einsum('bnm,bmd->bnd', p.astype(jnp.bfloat16), v,
                       preferred_element_type=jnp.float32)      # (B, Npad, hd)
        att_out = att_out + jnp.dot(
            a.reshape(rows, hd).astype(jnp.bfloat16), wproj[lo:hi, :],
            preferred_element_type=jnp.float32)
    x = x + att_out

    # --- MLP branch: x + fc2(gelu(fc1(ln2(x)))) ---
    h2 = _layernorm(x, ln2g_ref[0], ln2b_ref[0])
    m = jnp.dot(h2.astype(jnp.bfloat16), w1_ref[0],
                preferred_element_type=jnp.float32) + b1_ref[0]
    m = jax.nn.gelu(m, approximate=True)               # tanh form (EUP slot)
    m = jnp.dot(m.astype(jnp.bfloat16), w2_ref[0],
                preferred_element_type=jnp.float32) + b2_ref[0]
    acc_ref[...] = x + m

    # Write the activation back to HBM only once, after the last layer.
    @pl.when(layer == n_layers - 1)
    def _():
        o_ref[...] = acc_ref[...].reshape(nb, npad, c)


def head_kernel(cls_ref, g_ref, b_ref, w_ref, bias_ref, o_ref):
    # cls: (B, C) -> LayerNorm -> Linear -> (B, Kpad)
    h = _layernorm(cls_ref[...], g_ref[...], b_ref[...])
    o_ref[...] = jnp.dot(h, w_ref[...],
                         preferred_element_type=jnp.float32) + bias_ref[...]


# ----------------------------------------------------------------------------
# Pallas wrappers
# ----------------------------------------------------------------------------
def run_embed(xp_flat, w, b, cls, pos_pad, n_patches, batch, n_pad):
    d = w.shape[1]
    return pl.pallas_call(
        functools.partial(embed_kernel, n_patches),
        out_shape=jax.ShapeDtypeStruct((batch, n_pad, d), jnp.float32),
    )(xp_flat, w, b, cls, pos_pad)


def run_blocks(x, mask_bias, stacked, num_heads):
    B, Npad, C = x.shape
    depth = stacked["wqkv"].shape[0]
    mid = stacked["w1"].shape[-1]

    def wspec(*dims):
        nd = len(dims)
        return pl.BlockSpec((1,) + dims, lambda l, _nd=nd: (l,) + (0,) * _nd)

    def full(shape):
        return pl.BlockSpec(shape, lambda l, _n=len(shape): (0,) * _n)

    return pl.pallas_call(
        functools.partial(blocks_kernel, num_heads),
        out_shape=jax.ShapeDtypeStruct((B, Npad, C), jnp.float32),
        grid=(depth,),
        in_specs=[
            full((B, Npad, C)),
            full((1, Npad)),
            wspec(1, C), wspec(1, C),
            wspec(C, 3 * C), wspec(1, 3 * C),
            wspec(C, C), wspec(1, C),
            wspec(1, C), wspec(1, C),
            wspec(C, mid), wspec(1, mid),
            wspec(mid, C), wspec(1, C),
        ],
        out_specs=full((B, Npad, C)),
        scratch_shapes=[pltpu.VMEM((B * Npad, C), jnp.float32)],
        compiler_params=pltpu.CompilerParams(
            dimension_semantics=("arbitrary",)),
    )(x, mask_bias,
      stacked["ln1g"], stacked["ln1b"], stacked["wqkv"], stacked["bqkv"],
      stacked["wproj"], stacked["bproj"], stacked["ln2g"], stacked["ln2b"],
      stacked["w1"], stacked["b1"], stacked["w2"], stacked["b2"])


def run_head(cls_tok, g, b, w, bias):
    B = cls_tok.shape[0]
    K = w.shape[1]
    return pl.pallas_call(
        head_kernel,
        out_shape=jax.ShapeDtypeStruct((B, K), jnp.float32),
    )(cls_tok, g, b, w, bias)


# ----------------------------------------------------------------------------
# Glue: patch extraction (== Conv2d with kernel==stride==patch_size) + forward
# ----------------------------------------------------------------------------
def extract_patches(x_nchw, ph, pw):
    B, Cin, H, W = x_nchw.shape
    x = x_nchw.reshape(B, Cin, H // ph, ph, W // pw, pw)
    x = x.transpose(0, 2, 4, 1, 3, 5)                  # (B, H', W', Cin, ph, pw)
    return x.reshape(B, (H // ph) * (W // pw), Cin * ph * pw)


def vit_forward(x_img, params, cfg):
    ph, pw = cfg["patch"]
    heads, scale = cfg["heads"], cfg["scale"]
    n_tok, n_pad = cfg["n_tokens"], cfg["n_pad"]
    B = x_img.shape[0]
    C = params["pe_w"].shape[1]

    # Patch extraction + shift-pad so patch j lands at sequence row j+1;
    # row 0 (cls slot) and pad rows carry zeros into the embed matmul.
    xp = extract_patches(x_img, ph, pw)                          # (B, Np, P)
    Np = xp.shape[1]
    xp_pad = jnp.pad(xp, ((0, 0), (1, n_pad - Np - 1), (0, 0)))
    xp_flat = xp_pad.reshape(B * n_pad, xp.shape[-1])

    pos_pad = jnp.pad(params["pos"], ((0, 0), (0, n_pad - n_tok), (0, 0)))
    x = run_embed(xp_flat, params["pe_w"], params["pe_b"],
                  params["cls"], pos_pad, Np, B, n_pad)          # (B, Npad, C)

    # Stack per-layer weights on a leading depth axis; fold the q scale into
    # the q columns of wqkv/bqkv; weight matrices to bf16 (biases / LN stay f32).
    stacked = {k: jnp.stack([blk[k] for blk in params["blocks"]])
               for k in params["blocks"][0]}
    qscale = jnp.concatenate([jnp.full((C,), scale, jnp.float32),
                              jnp.ones((2 * C,), jnp.float32)])
    stacked["wqkv"] = stacked["wqkv"] * qscale
    stacked["bqkv"] = stacked["bqkv"] * qscale
    for k in ("wqkv", "wproj", "w1", "w2"):
        stacked[k] = stacked[k].astype(jnp.bfloat16)

    # Additive key-padding bias: 0 for valid tokens, -1e30 for pad columns.
    mask_bias = jnp.where(jnp.arange(n_pad)[None, :] < n_tok,
                          0.0, NEG_INF).astype(jnp.float32)      # (1, Npad)

    x = run_blocks(x, mask_bias, stacked, heads)                 # (B, Npad, C)

    # Final norm + classifier on the cls token only (lane-padded output).
    cls_tok = x[:, 0, :]
    K = params["head_w"].shape[1]
    Kpad = ((K + 127) // 128) * 128
    head_w_pad = jnp.pad(params["head_w"], ((0, 0), (0, Kpad - K)))
    head_b_pad = jnp.pad(params["head_b"], ((0, 0), (0, Kpad - K)))
    logits = run_head(cls_tok, params["norm_g"], params["norm_b"],
                      head_w_pad, head_b_pad)
    return logits[:, :K]


# ----------------------------------------------------------------------------
# Pure-JAX reference (mirrors the PyTorch forward exactly, no padding, f32)
# ----------------------------------------------------------------------------
def ref_forward(x_img, params, cfg):
    ph, pw = cfg["patch"]
    heads, hd, scale = cfg["heads"], cfg["head_dim"], cfg["scale"]
    B = x_img.shape[0]
    D = params["pe_w"].shape[1]

    def ln(x, g, b):
        mu = jnp.mean(x, axis=-1, keepdims=True)
        var = jnp.mean((x - mu) ** 2, axis=-1, keepdims=True)
        return (x - mu) / jnp.sqrt(var + LN_EPS) * g + b

    xp = extract_patches(x_img, ph, pw)
    emb = xp @ params["pe_w"] + params["pe_b"]
    cls = jnp.broadcast_to(params["cls"].reshape(1, 1, D), (B, 1, D))
    x = jnp.concatenate([cls, emb], axis=1) + params["pos"]
    N = x.shape[1]
    for blk in params["blocks"]:
        h = ln(x, blk["ln1g"], blk["ln1b"])
        qkv = h @ blk["wqkv"] + blk["bqkv"]
        qkv = qkv.reshape(B, N, 3, heads, hd).transpose(2, 0, 3, 1, 4)
        q, k, v = qkv[0], qkv[1], qkv[2]               # (B, heads, N, hd)
        attn = (q @ jnp.swapaxes(k, -2, -1)) * scale
        attn = jax.nn.softmax(attn, axis=-1)
        a = (attn @ v).transpose(0, 2, 1, 3).reshape(B, N, heads * hd)
        x = x + (a @ blk["wproj"] + blk["bproj"])
        h2 = ln(x, blk["ln2g"], blk["ln2b"])
        m = jax.nn.gelu(h2 @ blk["w1"] + blk["b1"], approximate=False)
        x = x + (m @ blk["w2"] + blk["b2"])
    cls_tok = ln(x, params["norm_g"], params["norm_b"])[:, 0]
    return cls_tok @ params["head_w"] + params["head_b"]


# ----------------------------------------------------------------------------
# Main
# ----------------------------------------------------------------------------
if __name__ == "__main__":
    # Small configuration consistent with the module's forward.
    B, Cin, Himg, Wimg = 2, 3, 16, 16
    ph = pw = 4
    D = 32            # embed_dim
    depth = 2
    heads = 4
    mlp_ratio = 4.0
    num_classes = 10

    head_dim = D // heads
    scale = head_dim ** (-0.5)     # qk_scale=None -> head_dim ** -0.5
    num_patches = (Himg // ph) * (Wimg // pw)
    N = num_patches + 1
    Npad = ((N + 7) // 8) * 8      # pad sequence length to a multiple of 8
    P = Cin * ph * pw
    mid = int(D * mlp_ratio)

    key = jax.random.PRNGKey(0)
    keys = iter(jax.random.split(key, 128))

    def init(shape, s=0.02):
        return (s * jax.random.normal(next(keys), shape)).astype(jnp.float32)

    # Conv weight (D, Cin, ph, pw) flattened to a (P, D) matmul weight.
    conv_w = init((D, Cin, ph, pw))
    params = {
        "pe_w": conv_w.reshape(D, P).T,              # (P, D)
        "pe_b": init((1, D)),
        "cls": jnp.zeros((1, D), jnp.float32),       # nn.Parameter(torch.zeros)
        "pos": init((1, N, D)),
        "blocks": [],
        "norm_g": jnp.ones((1, D), jnp.float32),
        "norm_b": jnp.zeros((1, D), jnp.float32),
        "head_w": init((D, num_classes)),
        "head_b": init((1, num_classes)),
    }
    for _ in range(depth):
        params["blocks"].append(dict(
            ln1g=jnp.ones((1, D), jnp.float32), ln1b=jnp.zeros((1, D), jnp.float32),
            wqkv=init((D, 3 * D)), bqkv=init((1, 3 * D)),     # qkv_bias=True
            wproj=init((D, D)), bproj=init((1, D)),
            ln2g=jnp.ones((1, D), jnp.float32), ln2b=jnp.zeros((1, D), jnp.float32),
            w1=init((D, mid)), b1=init((1, mid)),
            w2=init((mid, D)), b2=init((1, D)),
        ))

    cfg = {"patch": (ph, pw), "heads": heads, "head_dim": head_dim,
           "scale": scale, "n_tokens": N, "n_pad": Npad}

    x_img = jax.random.normal(next(keys), (B, Cin, Himg, Wimg), dtype=jnp.float32)

    out = vit_forward(x_img, params, cfg)
    out = jax.block_until_ready(out)
    assert out.shape == (B, num_classes)

    ref = jax.block_until_ready(ref_forward(x_img, params, cfg))
    # Tolerance covers bf16 matmul operands, tanh-GELU and approx reciprocal.
    np.testing.assert_allclose(np.asarray(out), np.asarray(ref), atol=2e-2, rtol=2e-2)

    print("KERNEL_OK")
</pallas_src>

<mosaic_0001>
module attributes {stable_mosaic.version = 11 : i64} {
  func.func @embed_kernel(%arg0: memref<48x48xf32, #tpu.memory_space<vmem>>, %arg1: memref<48x32xf32, #tpu.memory_space<vmem>>, %arg2: memref<1x32xf32, #tpu.memory_space<vmem>>, %arg3: memref<1x32xf32, #tpu.memory_space<vmem>>, %arg4: memref<1x24x32xf32, #tpu.memory_space<vmem>>, %arg5: memref<2x24x32xf32, #tpu.memory_space<vmem>>) attributes {dimension_semantics = [], scalar_prefetch = 0 : i64, scratch_operands = 0 : i64, tpu.core_type = #tpu.core_type<tc>} {
    %c0 = arith.constant 0 : index
    %c0_0 = arith.constant 0 : index
    %0 = vector.load %arg0[%c0, %c0_0] : memref<48x48xf32, #tpu.memory_space<vmem>>, vector<48x48xf32>
    %c0_1 = arith.constant 0 : index
    %c0_2 = arith.constant 0 : index
    %1 = vector.load %arg1[%c0_1, %c0_2] : memref<48x32xf32, #tpu.memory_space<vmem>>, vector<48x32xf32>
    %cst = arith.constant dense<0.000000e+00> : vector<48x32xf32>
    %2 = tpu.matmul %0, %1, %cst {dimension_numbers = #tpu.dot_dimension_numbers<[1], [0], [0], [1], [0, 0, 1, 1], [], []>} : vector<48x48xf32>, vector<48x32xf32>, vector<48x32xf32> -> vector<48x32xf32>
    %c0_3 = arith.constant 0 : index
    %c0_4 = arith.constant 0 : index
    %3 = vector.load %arg2[%c0_3, %c0_4] : memref<1x32xf32, #tpu.memory_space<vmem>>, vector<1x32xf32>
    %4 = vector.broadcast %3 : vector<1x32xf32> to vector<48x32xf32>
    %5 = arith.addf %2, %4 : vector<48x32xf32>
    %6 = vector.shape_cast %5 : vector<48x32xf32> to vector<2x24x32xf32>
    %7 = tpu.iota {dimensions = array<i32: 1>} : vector<1x24x1xi32>
    %c0_i32 = arith.constant 0 : i32
    %8 = vector.broadcast %c0_i32 : i32 to vector<1x24x1xi32>
    %9 = arith.cmpi eq, %7, %8 : vector<1x24x1xi32>
    %c0_5 = arith.constant 0 : index
    %c0_6 = arith.constant 0 : index
    %10 = vector.load %arg3[%c0_5, %c0_6] : memref<1x32xf32, #tpu.memory_space<vmem>>, vector<1x32xf32>
    %11 = vector.shape_cast %10 : vector<1x32xf32> to vector<1x1x32xf32>
    %c16_i32 = arith.constant 16 : i32
    %12 = vector.broadcast %c16_i32 : i32 to vector<1x24x1xi32>
    %13 = arith.cmpi sle, %7, %12 : vector<1x24x1xi32>
    %cst_7 = arith.constant 0.000000e+00 : f32
    %14 = vector.shape_cast %13 : vector<1x24x1xi1> to vector<1x24x1xi1>
    %15 = vector.broadcast %14 : vector<1x24x1xi1> to vector<2x24x32xi1>
    %16 = vector.broadcast %cst_7 : f32 to vector<2x24x32xf32>
    %17 = arith.select %15, %6, %16 : vector<2x24x32xi1>, vector<2x24x32xf32>
    %18 = vector.shape_cast %9 : vector<1x24x1xi1> to vector<1x24x1xi1>
    %19 = vector.broadcast %18 : vector<1x24x1xi1> to vector<2x24x32xi1>
    %20 = vector.shape_cast %11 : vector<1x1x32xf32> to vector<1x1x32xf32>
    %21 = vector.broadcast %20 : vector<1x1x32xf32> to vector<2x24x32xf32>
    %22 = arith.select %19, %21, %17 : vector<2x24x32xi1>, vector<2x24x32xf32>
    %c0_8 = arith.constant 0 : index
    %c0_9 = arith.constant 0 : index
    %c0_10 = arith.constant 0 : index
    %23 = vector.load %arg4[%c0_8, %c0_9, %c0_10] : memref<1x24x32xf32, #tpu.memory_space<vmem>>, vector<1x24x32xf32>
    %24 = vector.broadcast %23 : vector<1x24x32xf32> to vector<2x24x32xf32>
    %25 = arith.addf %22, %24 : vector<2x24x32xf32>
    %c0_11 = arith.constant 0 : index
    %c0_12 = arith.constant 0 : index
    %c0_13 = arith.constant 0 : index
    %26 = vector.load %arg5[%c0_11, %c0_12, %c0_13] : memref<2x24x32xf32, #tpu.memory_space<vmem>>, vector<2x24x32xf32>
    tpu.vector_store %arg5[%c0_11, %c0_12, %c0_13], %25 {strides = array<i32>} : memref<2x24x32xf32, #tpu.memory_space<vmem>>, vector<2x24x32xf32>,
    return
  }
}

</mosaic_0001>

<bundles_post_ra>
// kernel: tpu_custom_call.1
= control target key start
LH: loop header
LB: loop body
LE: loop exit
PB: predicated region body
PF: predicated region fallthrough
CT: control target
= control target key end

     0   :  { %vm40_vm0 = vcmask 392192   ;;  %s425_s0 = inlined_call_operand.vmem [shape: f32[48,48], index: 0, kind: input, shape index: {}]   ;;  %s426_s1 = inlined_call_operand.vmem [shape: f32[48,32], index: 1, kind: input, shape index: {}]   ;;  %s427_s2 = inlined_call_operand.vmem [shape: f32[1,32], index: 2, kind: input, shape index: {}]   ;;  %s428_s3 = inlined_call_operand.vmem [shape: f32[1,32], index: 3, kind: input, shape index: {}]   ;;  %s429_s4 = inlined_call_operand.vmem [shape: f32[1,24,32], index: 4, kind: input, shape index: {}]   ;;  %s430_s5 = inlined_call_operand.hbm [shape: f32[2,24,32], index: 5, kind: output, shape index: {}]  }
   0x1   :  { %v27_v0 = vld [vmem:[%s426_s1] sm:$0xff]  ;;  %v28_v1 = vld [vmem:[%s426_s1 + $0x8] sm:$0xff]  ;;  %v29_v2 = vld [vmem:[%s426_s1 + $0x10] sm:$0xff] }
   0x2   :  { %v268_v3 = vpack.c.bf16 %v28_v1, %v27_v0  ;;  %v30_v4 = vld [vmem:[%s426_s1 + $0x18] sm:$0xff]  ;;  %v31_v6 = vld [vmem:[%s426_s1 + $0x20] sm:$0xff]  ;;  %v32_v7 = vld [vmem:[%s426_s1 + $0x28] sm:$0xff] }
   0x3   :  { %v272_v5 = vpack.c.bf16 %v30_v4, %v29_v2  ;;  %v23_v8 = vld [vmem:[%s425_s0 + $0x10] sm:$0xff]  ;;  %v21_v9 = vld [vmem:[%s425_s0] sm:$0xff] }
   0x4   :  { %280 = vmatprep.subr.bf16.mxu1 %v268_v3  ;;  %269 = vmatprep.subr.bf16.mxu0 %v268_v3 }
   0x5   :  { %283 = vmatpush3.bf16.msra.mxu1 %v268_v3  ;;  %271 = vmatpush3.bf16.msra.mxu0 %v268_v3 }
   0x6   :  { %10 = vsyncpa [#allocation3], 0  ;;  %281 = vmatprep.subr.bf16.mxu1 %v272_v5  ;;  %273 = vmatprep.subr.bf16.mxu0 %v272_v5  ;;  %v276_v10 = vpack.c.bf16 %v32_v7, %v31_v6  ;;  %v24_v11 = vld [vmem:[%s425_s0 + $0x18] sm:$0xff]  ;;  %v22_v12 = vld [vmem:[%s425_s0 + $0x8] sm:$0xff]  ;;  %v154_v15 = vlaneseq  ;;  %vm204_vm3 = vcmask 261120  }
   0x7   :  { %262 = vmatprep.mubr.msk.f32.mxu1 %vm40_vm0, %v23_v8  ;;  %259 = vmatprep.mubr.msk.f32.mxu0 %vm40_vm0, %v21_v9  ;;  %v25_v13 = vld [vmem:[%s425_s0 + $0x20] sm:$0xff]  ;;  %v26_v14 = vld [vmem:[%s425_s0 + $0x28] sm:$0xff]  ;;  %v197_v29 = vld [vmem:[%s429_s4 + $0x10] sm:$0xff] }
   0x8   :  { %v155_v16 = vshrl.u32 %v154_v15, 7  ;;  %v227_v18 = vld [vmem:[%s427_s2] ss:$0 sm:$0xff]  ;;  %v196_v22 = vld [vmem:[%s429_s4 + $0x8] sm:$0xff] }
   0x9   :  { %284 = vmatpush3.bf16.msra.mxu1 %v272_v5  ;;  %275 = vmatpush3.bf16.msra.mxu0 %v272_v5  ;;  %v234_v20 = vld [vmem:[%s428_s3] ss:$0 sm:$0xff]  ;;  %s313_s3 = smov [#allocation2]  }
   0xa   :  { %282 = vmatprep.subr.bf16.mxu1 %v276_v10  ;;  %277 = vmatprep.subr.bf16.mxu0 %v276_v10  ;;  %v157_v17 = vadd.s32 16, %v155_v16  ;;  %vm158_vm1 = vcmp.eq.s32.totalorder %v155_v16, 0  ;;  %v195_v24 = vld [vmem:[%s429_s4] sm:$0xff]  ;;  %s216_s24 = sshll.u32 %s313_s3, 4  ;;  %s217_s24 = int_to_ptr.vmem [resolvable:$true] %s216_s24 }
   0xb   :  { %s289_s4 = scalar_lea.vmem %s217_s24, 768  ;;  %p294_p1 = scmp.lt.s32.totalorder %s217_s24, %s217_s24 }
   0xc   :  { %vm164_vm2 = vcmp.le.s32.totalorder %v157_v17, 16  ;;  %p290_p0 = scmp.ne.s32.totalorder %s217_s24, %s289_s4  ;;  %p295_p2 = scmp.lt.s32.totalorder %s289_s4, %s289_s4 }
   0xd   :  { %285 = vmatpush3.bf16.msra.mxu1 %v276_v10  ;;  %279 = vmatpush3.bf16.msra.mxu0 %v276_v10 }
   0xe   :  { %p296_p3 = por %p295_p2, %p294_p1 }
  0x10   :  { %263 = vmatmul.mubr.msk.f32.vlgmr.msra.gmra.mrb[0].mxu1 %vm40_vm0, %v24_v11  ;;  %260 = vmatmul.mubr.msk.f32.vlgmr.msra.gmra.mrb[0].mxu0 %vm40_vm0, %v22_v12  ;;  %p297_p4 = pnand %p296_p3, %p290_p0 }
  0x11   :  { %265 = vmatprep.mubr.msk.f32.mxu1 %vm40_vm0, %v25_v13 }
  0x14   :  { %266 = vmatmul.mubr.msk.f32.gmra.mrb[2].mxu1 %vm40_vm0, %v26_v14 }
  0xe3   :  { %v264_v19 = vpop.f32.mrb[0].mxu1  ;;  %v261_v21 = vpop.f32.mrb[0].mxu0 }
  0xe4   :  { %v141_v23 = vadd.f32 %v264_v19, %v227_v18  ;;  %v135_v25 = vpop.f32.mrb[1].mxu1  ;;  %v131_v26 = vadd.f32 %v261_v21, %v227_v18  ;;  %v125_v27 = vpop.f32.mrb[1].mxu0 }
  0xe5   :  { %v136_v28 = vadd.f32 %v227_v18, %v135_v25  ;;  %v126_v30 = vadd.f32 %v227_v18, %v125_v27 }
  0xe6   :  { %v192_v31 = vsel %vm158_vm1, %v234_v20, %v141_v23  ;;  %v199_v32 = vadd.f32 %v196_v22, %v131_v26 }
  0xe7   :  { %v201_v33 = vadd.f32 %v195_v24, %v192_v31  ;;  %v173_v34 = vsel %vm164_vm2, %v136_v28, 0.0  ;;  %v189_v35 = vsel %vm158_vm1, %v234_v20, %v126_v30  ;;  %v267_v36 = vpop.f32.mrb[2].mxu1 }
  0xe8   :  { %v200_v37 = vadd.f32 %v197_v29, %v173_v34  ;;  %206 = vst.msk [vmem:[#allocation2 + $0x8] sm:$0xff] %vm204_vm3, %v199_v32  ;;  %v198_v38 = vadd.f32 %v195_v24, %v189_v35  ;;  %v151_v39 = vadd.f32 %v267_v36, %v227_v18  ;;  %v145_v40 = vpop.f32.mrb[3].mxu1 }
  0xe9   :  { %208 = vst.msk [vmem:[#allocation2 + $0x18] sm:$0xff] %vm204_vm3, %v201_v33  ;;  %v146_v41 = vadd.f32 %v227_v18, %v145_v40 }
  0xea   :  { %207 = vst.msk [vmem:[#allocation2 + $0x10] sm:$0xff] %vm204_vm3, %v200_v37  ;;  %205 = vst.msk [vmem:[#allocation2] sm:$0xff] %vm204_vm3, %v198_v38  ;;  %v176_v42 = vsel %vm164_vm2, %v151_v39, 0.0 }
  0xeb   :  { %v203_v43 = vadd.f32 %v197_v29, %v176_v42  ;;  %v202_v44 = vadd.f32 %v196_v22, %v146_v41 }
  0xed   :  { %210 = vst.msk [vmem:[#allocation2 + $0x28] sm:$0xff] %vm204_vm3, %v203_v43  ;;  %209 = vst.msk [vmem:[#allocation2 + $0x20] sm:$0xff] %vm204_vm3, %v202_v44 }
  0xee   :  { %300 = shalt.err (!%p297_p4)
}
  0xef   :  { %s301_s27 = scalar_lea.hbm %s430_s5, 768 }
  0xf0   :  { %p302_p5 = scmp.ne.s32.totalorder %s430_s5, %s301_s27  ;;  %p305_p6 = scmp.lt.u32.totalorder %s301_s27, %s430_s5 }
  0xf2   :  { %p307_p7 = pnand %p305_p6, %p302_p5 }
  0xf4   :  { %310 = shalt.err (!%p307_p7)
}
  0xf5   :  { %s314_s7 = smov 128   ;;  %s315_s8 = smov 8  }
  0xf6   :  { %222 = dma.vmem_to_hbm [thread:$0]  %s217_s24, 768, %s430_s5, [#allocation3], %s314_s7, %s314_s7, %s315_s8  }
  0xf7   :  { %311 = dma.done.wait [#allocation3], 768  }
  0xf8   :  { %312 = vsyncadd [#allocation3], 4294966528 }
  0xf9   :  { %226 = vsyncpa [#allocation3], 1 }

</bundles_post_ra>
